<compile_context>
chip_gen: v6e
topology: v6e:2x2x1
jax: 0.10.0
libtpu: 0.0.40
codegen_flags: <defaults>
</compile_context>

<pallas_src>
import functools

import jax
import jax.numpy as jnp
from jax import lax
from jax.experimental import pallas as pl
from jax.experimental.pallas import tpu as pltpu

MAX_TILE_N = 8192   # lane tile upper bound (multiple of 128); ~0.4 MiB of VMEM


def _hash_u32(x):
    """Cheap 32-bit avalanche hash (lowes-style mixer), uint32 -> uint32."""
    x = x ^ (x >> 16)
    x = x * jnp.uint32(0x7FEB352D)
    x = x ^ (x >> 15)
    x = x * jnp.uint32(0x846CA68B)
    x = x ^ (x >> 16)
    return x


def _aug_kernel(seed_ref, p_ref, x_ref, o_ref):
    """One lane-tile of the fused augmentation.

    seed_ref : SMEM int32[1]   per-call RNG seed
    p_ref    : SMEM f32[22]    [0:9]  shear matrix (row major)
                               [9:18] rotation matrix (row major)
                               [18:21] translation
                               [21]   noise half-range (0.0 if gate off)
    x_ref    : VMEM f32[3,TN]  coords-on-sublanes slab tile
    o_ref    : VMEM f32[3,TN]  output tile
    """
    blk = pl.program_id(0)
    tn = x_ref.shape[1]

    xb = x_ref[...]                               # (3, TN) f32
    x0 = xb[0:1, :]
    x1 = xb[1:2, :]
    x2 = xb[2:3, :]

    # ---- shear: y = S @ x (broadcast-scalar FMAs on the VPU) ----
    y0 = p_ref[0] * x0 + p_ref[1] * x1 + p_ref[2] * x2
    y1 = p_ref[3] * x0 + p_ref[4] * x1 + p_ref[5] * x2
    y2 = p_ref[6] * x0 + p_ref[7] * x1 + p_ref[8] * x2

    # ---- additive uniform noise in [-scale, scale) ----
    # Keyed by (global point index, coord row, seed) so results are independent
    # of the tile size.
    two_scale = 2.0 * p_ref[21]
    g = blk * tn + lax.broadcasted_iota(jnp.int32, (1, tn), 1)   # global point idx
    base = g * 3 + seed_ref[0]

    def _unif(key_i32):
        h = _hash_u32(lax.bitcast_convert_type(key_i32, jnp.uint32))
        # 23 random mantissa bits -> float in [1, 2), shift to [-0.5, 0.5)
        fbits = (h >> 9) | jnp.uint32(0x3F800000)
        return lax.bitcast_convert_type(fbits, jnp.float32) - 1.5

    y0 = y0 + two_scale * _unif(base)
    y1 = y1 + two_scale * _unif(base + 1)
    y2 = y2 + two_scale * _unif(base + 2)

    # ---- rotation + translation: z = R @ y + t (t folded as constant term) ----
    z0 = p_ref[9] * y0 + p_ref[10] * y1 + p_ref[11] * y2 + p_ref[18]
    z1 = p_ref[12] * y0 + p_ref[13] * y1 + p_ref[14] * y2 + p_ref[19]
    z2 = p_ref[15] * y0 + p_ref[16] * y1 + p_ref[17] * y2 + p_ref[20]

    o_ref[0:1, :] = z0
    o_ref[1:2, :] = z1
    o_ref[2:3, :] = z2


def _rotation_matrix(angles):
    ax, ay, az = angles[0], angles[1], angles[2]
    cx, sx = jnp.cos(ax), jnp.sin(ax)
    cy, sy = jnp.cos(ay), jnp.sin(ay)
    cz, sz = jnp.cos(az), jnp.sin(az)
    rx = (jnp.eye(3, dtype=jnp.float32)
          .at[1, 1].set(cx).at[1, 2].set(-sx).at[2, 1].set(sx).at[2, 2].set(cx))
    ry = (jnp.eye(3, dtype=jnp.float32)
          .at[0, 0].set(cy).at[0, 2].set(sy).at[2, 0].set(-sy).at[2, 2].set(cy))
    rz = (jnp.eye(3, dtype=jnp.float32)
          .at[0, 0].set(cz).at[0, 1].set(-sz).at[1, 0].set(sz).at[1, 1].set(cz))
    return rz @ ry @ rx


def _round_up(n, k):
    return ((n + k - 1) // k) * k


def _choose_tile(m128):
    """Pick a lane tile: big (bandwidth), but keep >=2 grid steps when possible
    so v7x can shard the parallel axis across its 2 TensorCores."""
    t = min(MAX_TILE_N, m128)
    if m128 > 128 and m128 // t < 2:
        t = max(128, _round_up((m128 + 1) // 2, 128))
    return t


@functools.partial(
    jax.jit,
    static_argnames=("shear_range", "noise_range", "rotation_range",
                     "translate_range", "probability"),
)
def random_augmentation(x, key, *, shear_range=0.1, noise_range=0.02,
                        rotation_range=0.26, translate_range=0.5,
                        probability=0.5):
    """Forward pass of RandomAugmentation for fibers x of shape (B, P, 3)."""
    B, P, C = x.shape
    assert C == 3, "fibers are sequences of 3-D points"
    x_dtype = x.dtype
    x = x.astype(jnp.float32)

    k_apply, k_shear, k_rot, k_trans, k_seed = jax.random.split(key, 5)

    # RandomApply gates, one per augmentation (shear, noise, rotation, translation)
    gate = jax.random.bernoulli(k_apply, probability, (4,))

    # shear matrix (uniform off-diagonals), identity when gate off
    sh = jax.random.uniform(k_shear, (6,), minval=-shear_range, maxval=shear_range)
    s3 = (jnp.eye(3, dtype=jnp.float32)
          .at[0, 1].set(sh[0]).at[0, 2].set(sh[1])
          .at[1, 0].set(sh[2]).at[1, 2].set(sh[3])
          .at[2, 0].set(sh[4]).at[2, 1].set(sh[5]))
    s3 = jnp.where(gate[0], s3, jnp.eye(3, dtype=jnp.float32))

    # noise half-range (0 when gate off)
    noise_scale = jnp.where(gate[1], jnp.float32(noise_range), jnp.float32(0.0))

    # rotation matrix, identity when gate off
    angles = jax.random.uniform(k_rot, (3,), minval=-rotation_range,
                                maxval=rotation_range)
    r3 = jnp.where(gate[2], _rotation_matrix(angles), jnp.eye(3, dtype=jnp.float32))

    # translation, zero when gate off
    t3 = jax.random.uniform(k_trans, (3,), minval=-translate_range,
                            maxval=translate_range)
    t3 = jnp.where(gate[3], t3, jnp.zeros((3,), jnp.float32))

    # pack all scalar parameters for SMEM
    params = jnp.concatenate(
        [s3.reshape(9), r3.reshape(9), t3.reshape(3),
         noise_scale.reshape(1)]).astype(jnp.float32)          # (22,)

    seed = jax.random.randint(k_seed, (1,), 0, jnp.iinfo(jnp.int32).max,
                              dtype=jnp.int32)

    # ---- layout plumbing: (B, P, 3) -> (3, M_pad), coords on sublanes ----
    m = B * P
    m128 = _round_up(m, 128)
    tile_n = _choose_tile(m128)
    m_pad = _round_up(m, tile_n)

    xt = x.reshape(m, 3).T                                     # (3, M)
    xt = jnp.pad(xt, ((0, 0), (0, m_pad - m)))                 # (3, M_pad)

    n_blk = m_pad // tile_n
    out = pl.pallas_call(
        _aug_kernel,
        out_shape=jax.ShapeDtypeStruct((3, m_pad), jnp.float32),
        grid=(n_blk,),
        in_specs=[
            pl.BlockSpec(memory_space=pltpu.MemorySpace.SMEM),        # seed
            pl.BlockSpec(memory_space=pltpu.MemorySpace.SMEM),        # params
            pl.BlockSpec((3, tile_n), lambda i: (0, i)),              # x tile
        ],
        out_specs=pl.BlockSpec((3, tile_n), lambda i: (0, i)),
        compiler_params=pltpu.CompilerParams(
            dimension_semantics=("parallel",)),
    )(seed, params, xt)

    return out[:, :m].T.reshape(B, P, 3).astype(x_dtype)


if __name__ == "__main__":
    key = jax.random.PRNGKey(0)
    k_x, k_aug = jax.random.split(key)
    # small fiber batch: 2 fibers, 64 points each, 3-D coordinates
    x = jax.random.normal(k_x, (2, 64, 3), dtype=jnp.float32)

    y = random_augmentation(
        x, k_aug,
        shear_range=0.1, noise_range=0.02, rotation_range=0.26,
        translate_range=0.5, probability=0.5)
    jax.block_until_ready(y)

    assert y.shape == x.shape and y.dtype == x.dtype
    assert bool(jnp.all(jnp.isfinite(y)))
    print("KERNEL_OK")
</pallas_src>

<mosaic_0001>
module attributes {stable_mosaic.version = 11 : i64} {
  func.func @_aug_kernel(%arg0: i32, %arg1: memref<1xi32, #tpu.memory_space<smem>>, %arg2: memref<22xf32, #tpu.memory_space<smem>>, %arg3: memref<3x128xf32, #tpu.memory_space<vmem>>, %arg4: memref<3x128xf32, #tpu.memory_space<vmem>>) attributes {dimension_semantics = [#tpu.dimension_semantics<parallel>], iteration_bounds = array<i64: 1>, scalar_prefetch = 0 : i64, scratch_operands = 0 : i64, tpu.core_type = #tpu.core_type<tc>, window_params = [{transform_indices = @transform_0, window_bounds = array<i64: 1>}, {transform_indices = @transform_1, window_bounds = array<i64: 22>}, {transform_indices = @transform_2, window_bounds = array<i64: 3, 128>}, {transform_indices = @transform_3, window_bounds = array<i64: 3, 128>}]} {
    %c0 = arith.constant 0 : index
    %c0_0 = arith.constant 0 : index
    %0 = vector.load %arg3[%c0, %c0_0] : memref<3x128xf32, #tpu.memory_space<vmem>>, vector<3x128xf32>
    %1 = vector.extract_strided_slice %0 {offsets = [0, 0], sizes = [1, 128], strides = [1, 1]} : vector<3x128xf32> to vector<1x128xf32>
    %2 = vector.extract_strided_slice %0 {offsets = [1, 0], sizes = [1, 128], strides = [1, 1]} : vector<3x128xf32> to vector<1x128xf32>
    %3 = vector.extract_strided_slice %0 {offsets = [2, 0], sizes = [1, 128], strides = [1, 1]} : vector<3x128xf32> to vector<1x128xf32>
    %c0_1 = arith.constant 0 : index
    %4 = memref.load %arg2[%c0_1] : memref<22xf32, #tpu.memory_space<smem>>
    %5 = vector.broadcast %4 : f32 to vector<1x128xf32>
    %6 = arith.mulf %5, %1 : vector<1x128xf32>
    %c1 = arith.constant 1 : index
    %7 = memref.load %arg2[%c1] : memref<22xf32, #tpu.memory_space<smem>>
    %8 = vector.broadcast %7 : f32 to vector<1x128xf32>
    %9 = arith.mulf %8, %2 : vector<1x128xf32>
    %10 = arith.addf %6, %9 : vector<1x128xf32>
    %c2 = arith.constant 2 : index
    %11 = memref.load %arg2[%c2] : memref<22xf32, #tpu.memory_space<smem>>
    %12 = vector.broadcast %11 : f32 to vector<1x128xf32>
    %13 = arith.mulf %12, %3 : vector<1x128xf32>
    %14 = arith.addf %10, %13 : vector<1x128xf32>
    %c3 = arith.constant 3 : index
    %15 = memref.load %arg2[%c3] : memref<22xf32, #tpu.memory_space<smem>>
    %16 = vector.broadcast %15 : f32 to vector<1x128xf32>
    %17 = arith.mulf %16, %1 : vector<1x128xf32>
    %c4 = arith.constant 4 : index
    %18 = memref.load %arg2[%c4] : memref<22xf32, #tpu.memory_space<smem>>
    %19 = vector.broadcast %18 : f32 to vector<1x128xf32>
    %20 = arith.mulf %19, %2 : vector<1x128xf32>
    %21 = arith.addf %17, %20 : vector<1x128xf32>
    %c5 = arith.constant 5 : index
    %22 = memref.load %arg2[%c5] : memref<22xf32, #tpu.memory_space<smem>>
    %23 = vector.broadcast %22 : f32 to vector<1x128xf32>
    %24 = arith.mulf %23, %3 : vector<1x128xf32>
    %25 = arith.addf %21, %24 : vector<1x128xf32>
    %c6 = arith.constant 6 : index
    %26 = memref.load %arg2[%c6] : memref<22xf32, #tpu.memory_space<smem>>
    %27 = vector.broadcast %26 : f32 to vector<1x128xf32>
    %28 = arith.mulf %27, %1 : vector<1x128xf32>
    %c7 = arith.constant 7 : index
    %29 = memref.load %arg2[%c7] : memref<22xf32, #tpu.memory_space<smem>>
    %30 = vector.broadcast %29 : f32 to vector<1x128xf32>
    %31 = arith.mulf %30, %2 : vector<1x128xf32>
    %32 = arith.addf %28, %31 : vector<1x128xf32>
    %c8 = arith.constant 8 : index
    %33 = memref.load %arg2[%c8] : memref<22xf32, #tpu.memory_space<smem>>
    %34 = vector.broadcast %33 : f32 to vector<1x128xf32>
    %35 = arith.mulf %34, %3 : vector<1x128xf32>
    %36 = arith.addf %32, %35 : vector<1x128xf32>
    %c21 = arith.constant 21 : index
    %37 = memref.load %arg2[%c21] : memref<22xf32, #tpu.memory_space<smem>>
    %cst = arith.constant 2.000000e+00 : f32
    %38 = arith.mulf %cst, %37 : f32
    %c128_i32 = arith.constant 128 : i32
    %39 = arith.muli %arg0, %c128_i32 : i32
    %40 = tpu.iota {dimensions = array<i32: 1>} : vector<1x128xi32>
    %41 = vector.broadcast %39 : i32 to vector<1x128xi32>
    %42 = arith.addi %41, %40 : vector<1x128xi32>
    %c3_i32 = arith.constant 3 : i32
    %43 = vector.broadcast %c3_i32 : i32 to vector<1x128xi32>
    %44 = arith.muli %42, %43 : vector<1x128xi32>
    %c0_2 = arith.constant 0 : index
    %45 = memref.load %arg1[%c0_2] : memref<1xi32, #tpu.memory_space<smem>>
    %46 = vector.broadcast %45 : i32 to vector<1x128xi32>
    %47 = arith.addi %44, %46 : vector<1x128xi32>
    %48 = tpu.bitcast %47 : vector<1x128xi32> -> vector<1x128xi32>
    %c16_i32 = arith.constant 16 : i32
    %49 = vector.broadcast %c16_i32 : i32 to vector<1x128xi32>
    %50 = arith.shrui %48, %49 : vector<1x128xi32>
    %51 = arith.xori %48, %50 : vector<1x128xi32>
    %c2146121005_i32 = arith.constant 2146121005 : i32
    %52 = vector.broadcast %c2146121005_i32 : i32 to vector<1x128xi32>
    %53 = arith.muli %51, %52 : vector<1x128xi32>
    %c15_i32 = arith.constant 15 : i32
    %54 = vector.broadcast %c15_i32 : i32 to vector<1x128xi32>
    %55 = arith.shrui %53, %54 : vector<1x128xi32>
    %56 = arith.xori %53, %55 : vector<1x128xi32>
    %c-2073254261_i32 = arith.constant -2073254261 : i32
    %57 = vector.broadcast %c-2073254261_i32 : i32 to vector<1x128xi32>
    %58 = arith.muli %56, %57 : vector<1x128xi32>
    %c16_i32_3 = arith.constant 16 : i32
    %59 = vector.broadcast %c16_i32_3 : i32 to vector<1x128xi32>
    %60 = arith.shrui %58, %59 : vector<1x128xi32>
    %61 = arith.xori %58, %60 : vector<1x128xi32>
    %c9_i32 = arith.constant 9 : i32
    %62 = vector.broadcast %c9_i32 : i32 to vector<1x128xi32>
    %63 = arith.shrui %61, %62 : vector<1x128xi32>
    %c1065353216_i32 = arith.constant 1065353216 : i32
    %64 = vector.broadcast %c1065353216_i32 : i32 to vector<1x128xi32>
    %65 = arith.ori %63, %64 : vector<1x128xi32>
    %66 = tpu.bitcast %65 : vector<1x128xi32> -> vector<1x128xf32>
    %cst_4 = arith.constant 1.500000e+00 : f32
    %67 = vector.broadcast %cst_4 : f32 to vector<1x128xf32>
    %68 = arith.subf %66, %67 : vector<1x128xf32>
    %69 = vector.broadcast %38 : f32 to vector<1x128xf32>
    %70 = arith.mulf %69, %68 : vector<1x128xf32>
    %71 = arith.addf %14, %70 : vector<1x128xf32>
    %c1_i32 = arith.constant 1 : i32
    %72 = vector.broadcast %c1_i32 : i32 to vector<1x128xi32>
    %73 = arith.addi %47, %72 : vector<1x128xi32>
    %74 = tpu.bitcast %73 : vector<1x128xi32> -> vector<1x128xi32>
    %c16_i32_5 = arith.constant 16 : i32
    %75 = vector.broadcast %c16_i32_5 : i32 to vector<1x128xi32>
    %76 = arith.shrui %74, %75 : vector<1x128xi32>
    %77 = arith.xori %74, %76 : vector<1x128xi32>
    %c2146121005_i32_6 = arith.constant 2146121005 : i32
    %78 = vector.broadcast %c2146121005_i32_6 : i32 to vector<1x128xi32>
    %79 = arith.muli %77, %78 : vector<1x128xi32>
    %c15_i32_7 = arith.constant 15 : i32
    %80 = vector.broadcast %c15_i32_7 : i32 to vector<1x128xi32>
    %81 = arith.shrui %79, %80 : vector<1x128xi32>
    %82 = arith.xori %79, %81 : vector<1x128xi32>
    %c-2073254261_i32_8 = arith.constant -2073254261 : i32
    %83 = vector.broadcast %c-2073254261_i32_8 : i32 to vector<1x128xi32>
    %84 = arith.muli %82, %83 : vector<1x128xi32>
    %c16_i32_9 = arith.constant 16 : i32
    %85 = vector.broadcast %c16_i32_9 : i32 to vector<1x128xi32>
    %86 = arith.shrui %84, %85 : vector<1x128xi32>
    %87 = arith.xori %84, %86 : vector<1x128xi32>
    %c9_i32_10 = arith.constant 9 : i32
    %88 = vector.broadcast %c9_i32_10 : i32 to vector<1x128xi32>
    %89 = arith.shrui %87, %88 : vector<1x128xi32>
    %c1065353216_i32_11 = arith.constant 1065353216 : i32
    %90 = vector.broadcast %c1065353216_i32_11 : i32 to vector<1x128xi32>
    %91 = arith.ori %89, %90 : vector<1x128xi32>
    %92 = tpu.bitcast %91 : vector<1x128xi32> -> vector<1x128xf32>
    %cst_12 = arith.constant 1.500000e+00 : f32
    %93 = vector.broadcast %cst_12 : f32 to vector<1x128xf32>
    %94 = arith.subf %92, %93 : vector<1x128xf32>
    %95 = vector.broadcast %38 : f32 to vector<1x128xf32>
    %96 = arith.mulf %95, %94 : vector<1x128xf32>
    %97 = arith.addf %25, %96 : vector<1x128xf32>
    %c2_i32 = arith.constant 2 : i32
    %98 = vector.broadcast %c2_i32 : i32 to vector<1x128xi32>
    %99 = arith.addi %47, %98 : vector<1x128xi32>
    %100 = tpu.bitcast %99 : vector<1x128xi32> -> vector<1x128xi32>
    %c16_i32_13 = arith.constant 16 : i32
    %101 = vector.broadcast %c16_i32_13 : i32 to vector<1x128xi32>
    %102 = arith.shrui %100, %101 : vector<1x128xi32>
    %103 = arith.xori %100, %102 : vector<1x128xi32>
    %c2146121005_i32_14 = arith.constant 2146121005 : i32
    %104 = vector.broadcast %c2146121005_i32_14 : i32 to vector<1x128xi32>
    %105 = arith.muli %103, %104 : vector<1x128xi32>
    %c15_i32_15 = arith.constant 15 : i32
    %106 = vector.broadcast %c15_i32_15 : i32 to vector<1x128xi32>
    %107 = arith.shrui %105, %106 : vector<1x128xi32>
    %108 = arith.xori %105, %107 : vector<1x128xi32>
    %c-2073254261_i32_16 = arith.constant -2073254261 : i32
    %109 = vector.broadcast %c-2073254261_i32_16 : i32 to vector<1x128xi32>
    %110 = arith.muli %108, %109 : vector<1x128xi32>
    %c16_i32_17 = arith.constant 16 : i32
    %111 = vector.broadcast %c16_i32_17 : i32 to vector<1x128xi32>
    %112 = arith.shrui %110, %111 : vector<1x128xi32>
    %113 = arith.xori %110, %112 : vector<1x128xi32>
    %c9_i32_18 = arith.constant 9 : i32
    %114 = vector.broadcast %c9_i32_18 : i32 to vector<1x128xi32>
    %115 = arith.shrui %113, %114 : vector<1x128xi32>
    %c1065353216_i32_19 = arith.constant 1065353216 : i32
    %116 = vector.broadcast %c1065353216_i32_19 : i32 to vector<1x128xi32>
    %117 = arith.ori %115, %116 : vector<1x128xi32>
    %118 = tpu.bitcast %117 : vector<1x128xi32> -> vector<1x128xf32>
    %cst_20 = arith.constant 1.500000e+00 : f32
    %119 = vector.broadcast %cst_20 : f32 to vector<1x128xf32>
    %120 = arith.subf %118, %119 : vector<1x128xf32>
    %121 = vector.broadcast %38 : f32 to vector<1x128xf32>
    %122 = arith.mulf %121, %120 : vector<1x128xf32>
    %123 = arith.addf %36, %122 : vector<1x128xf32>
    %c9 = arith.constant 9 : index
    %124 = memref.load %arg2[%c9] : memref<22xf32, #tpu.memory_space<smem>>
    %125 = vector.broadcast %124 : f32 to vector<1x128xf32>
    %126 = arith.mulf %125, %71 : vector<1x128xf32>
    %c10 = arith.constant 10 : index
    %127 = memref.load %arg2[%c10] : memref<22xf32, #tpu.memory_space<smem>>
    %128 = vector.broadcast %127 : f32 to vector<1x128xf32>
    %129 = arith.mulf %128, %97 : vector<1x128xf32>
    %130 = arith.addf %126, %129 : vector<1x128xf32>
    %c11 = arith.constant 11 : index
    %131 = memref.load %arg2[%c11] : memref<22xf32, #tpu.memory_space<smem>>
    %132 = vector.broadcast %131 : f32 to vector<1x128xf32>
    %133 = arith.mulf %132, %123 : vector<1x128xf32>
    %134 = arith.addf %130, %133 : vector<1x128xf32>
    %c18 = arith.constant 18 : index
    %135 = memref.load %arg2[%c18] : memref<22xf32, #tpu.memory_space<smem>>
    %136 = vector.broadcast %135 : f32 to vector<1x128xf32>
    %137 = arith.addf %134, %136 : vector<1x128xf32>
    %c12 = arith.constant 12 : index
    %138 = memref.load %arg2[%c12] : memref<22xf32, #tpu.memory_space<smem>>
    %139 = vector.broadcast %138 : f32 to vector<1x128xf32>
    %140 = arith.mulf %139, %71 : vector<1x128xf32>
    %c13 = arith.constant 13 : index
    %141 = memref.load %arg2[%c13] : memref<22xf32, #tpu.memory_space<smem>>
    %142 = vector.broadcast %141 : f32 to vector<1x128xf32>
    %143 = arith.mulf %142, %97 : vector<1x128xf32>
    %144 = arith.addf %140, %143 : vector<1x128xf32>
    %c14 = arith.constant 14 : index
    %145 = memref.load %arg2[%c14] : memref<22xf32, #tpu.memory_space<smem>>
    %146 = vector.broadcast %145 : f32 to vector<1x128xf32>
    %147 = arith.mulf %146, %123 : vector<1x128xf32>
    %148 = arith.addf %144, %147 : vector<1x128xf32>
    %c19 = arith.constant 19 : index
    %149 = memref.load %arg2[%c19] : memref<22xf32, #tpu.memory_space<smem>>
    %150 = vector.broadcast %149 : f32 to vector<1x128xf32>
    %151 = arith.addf %148, %150 : vector<1x128xf32>
    %c15 = arith.constant 15 : index
    %152 = memref.load %arg2[%c15] : memref<22xf32, #tpu.memory_space<smem>>
    %153 = vector.broadcast %152 : f32 to vector<1x128xf32>
    %154 = arith.mulf %153, %71 : vector<1x128xf32>
    %c16 = arith.constant 16 : index
    %155 = memref.load %arg2[%c16] : memref<22xf32, #tpu.memory_space<smem>>
    %156 = vector.broadcast %155 : f32 to vector<1x128xf32>
    %157 = arith.mulf %156, %97 : vector<1x128xf32>
    %158 = arith.addf %154, %157 : vector<1x128xf32>
    %c17 = arith.constant 17 : index
    %159 = memref.load %arg2[%c17] : memref<22xf32, #tpu.memory_space<smem>>
    %160 = vector.broadcast %159 : f32 to vector<1x128xf32>
    %161 = arith.mulf %160, %123 : vector<1x128xf32>
    %162 = arith.addf %158, %161 : vector<1x128xf32>
    %c20 = arith.constant 20 : index
    %163 = memref.load %arg2[%c20] : memref<22xf32, #tpu.memory_space<smem>>
    %164 = vector.broadcast %163 : f32 to vector<1x128xf32>
    %165 = arith.addf %162, %164 : vector<1x128xf32>
    %c0_21 = arith.constant 0 : index
    %c0_22 = arith.constant 0 : index
    %166 = vector.load %arg4[%c0_21, %c0_22] : memref<3x128xf32, #tpu.memory_space<vmem>>, vector<1x128xf32>
    tpu.vector_store %arg4[%c0_21, %c0_22], %137 {strides = array<i32>} : memref<3x128xf32, #tpu.memory_space<vmem>>, vector<1x128xf32>,
    %c1_23 = arith.constant 1 : index
    %c0_24 = arith.constant 0 : index
    %167 = vector.load %arg4[%c1_23, %c0_24] : memref<3x128xf32, #tpu.memory_space<vmem>>, vector<1x128xf32>
    tpu.vector_store %arg4[%c1_23, %c0_24], %151 {strides = array<i32>} : memref<3x128xf32, #tpu.memory_space<vmem>>, vector<1x128xf32>,
    %c2_25 = arith.constant 2 : index
    %c0_26 = arith.constant 0 : index
    %168 = vector.load %arg4[%c2_25, %c0_26] : memref<3x128xf32, #tpu.memory_space<vmem>>, vector<1x128xf32>
    tpu.vector_store %arg4[%c2_25, %c0_26], %165 {strides = array<i32>} : memref<3x128xf32, #tpu.memory_space<vmem>>, vector<1x128xf32>,
    return
  }
  func.func @transform_0(%arg0: i32) -> i32 {
    %c0_i32 = arith.constant 0 : i32
    %c0_i32_0 = arith.constant 0 : i32
    return %c0_i32 : i32
  }
  func.func @transform_1(%arg0: i32) -> i32 {
    %c0_i32 = arith.constant 0 : i32
    %c0_i32_0 = arith.constant 0 : i32
    return %c0_i32 : i32
  }
  func.func @transform_2(%arg0: i32) -> (i32, i32) {
    %c0_i32 = arith.constant 0 : i32
    %c0_i32_0 = arith.constant 0 : i32
    return %c0_i32, %arg0 : i32, i32
  }
  func.func @transform_3(%arg0: i32) -> (i32, i32) {
    %c0_i32 = arith.constant 0 : i32
    %c0_i32_0 = arith.constant 0 : i32
    return %c0_i32, %arg0 : i32, i32
  }
}

</mosaic_0001>

<bundles_post_ra>
// kernel: random_augmentation.3
= control target key start
LH: loop header
LB: loop body
LE: loop exit
PB: predicated region body
PF: predicated region fallthrough
CT: control target
= control target key end

     0   :  { %9 = vsyncpa [#allocation4], 0  ;;  %s321_s0 = inlined_call_operand.<no memory space> [shape: s32[1], index: 0, kind: input, shape index: {}]   ;;  %s322_s1 = inlined_call_operand.vmem [shape: f32[22], index: 1, kind: input, shape index: {}]   ;;  %s323_s2 = inlined_call_operand.vmem [shape: f32[3,128], index: 2, kind: input, shape index: {}]   ;;  %s324_s3 = inlined_call_operand.vmem [shape: f32[3,128], index: 3, kind: output, shape index: {}]  }
   0x1   :  { %s18_s14 = sshll.u32 %s322_s1, 4  ;;  %s19_s14 = int_to_ptr.vmem [resolvable:$true] %s18_s14 }
   0x2   :  { %s211_s15 = scalar_lea.vmem %s19_s14, 16  ;;  %p216_p1 = scmp.lt.s32.totalorder %s19_s14, %s19_s14 }
   0x3   :  { %p212_p0 = scmp.ne.s32.totalorder %s19_s14, %s211_s15  ;;  %p217_p2 = scmp.lt.s32.totalorder %s211_s15, %s211_s15 }
   0x5   :  { %p218_p3 = por %p217_p2, %p216_p1 }
   0x7   :  { %p219_p4 = pnand %p218_p3, %p212_p0 }
   0x9   :  { %222 = shalt.err (!%p219_p4)
}
   0xa   :  { %s225_s16 = smov [#allocation3]  }
   0xb   :  { %21 = dma.vmem_to_smem %s19_s14, 16, %s225_s16, [#allocation4]  }
   0xc   :  { %223 = dma.done.wait [#allocation4], 16  }
   0xd   :  { %224 = vsyncadd [#allocation4], 4294967280 }
   0xe   :  { %27 = sfence }
   0xf   :  { %v83_v0 = vlaneseq  ;;  %v89_v2 = vstv %s321_s0  ;;  %s186_s1 = sld [smem:[#allocation3 + $0x1]]  ;;  %v28_v12 = vld [vmem:[%s323_s2] sm:$0x7] }
  0x10   :  { %s252_s19 = sld [smem:[#allocation3]] }
  0x11   :  { %v84_v1 = vand.u32 127, %v83_v0  ;;  %s189_s20 = sld [smem:[#allocation3 + $0x4]] }
  0x12   :  { %s254_s21 = sld [smem:[#allocation3 + $0x2]] }
  0x13   :  { %v87_v3 = vmul.u32 3, %v84_v1  ;;  %s256_s22 = sld [smem:[#allocation3 + $0x3]] }
  0x14   :  { %s258_s23 = sld [smem:[#allocation3 + $0x5]] }
  0x15   :  { %v90_v4 = vadd.s32 %v89_v2, %v87_v3  ;;  %s260_s24 = sld [smem:[#allocation3 + $0x7]]  ;;  %v33_v13 = vstv %s186_s1 }
  0x16   :  { %s265_s26 = sld [smem:[#allocation3 + $0x6]]  ;;  %v34_v18 = vmul.f32 %v33_v13, %v28_v12  ;;  %v30_v20 = vstv %s252_s19 }
  0x17   :  { %v91_v5 = vshrl.u32 %v90_v4, 16  ;;  %v106_v6 = vadd.s32 1, %v90_v4  ;;  %v121_v10 = vadd.s32 2, %v90_v4  ;;  %s267_s27 = sld [smem:[#allocation3 + $0x8]]  ;;  %v50_v16 = vstv %s189_s20 }
  0x18   :  { %s269_s28 = sld [smem:[#allocation3 + $0x15]]  ;;  %v40_v21 = vstv %s254_s21  ;;  %v51_v25 = vmul.f32 %v50_v16, %v28_v12  ;;  %v31_v31 = vmul.f32 %v30_v20, %v28_v12  ;;  %v36_v32 = vrot.slane %v34_v18, 1 }
  0x19   :  { %v92_v7 = vxor.u32 %v91_v5, %v90_v4  ;;  %v107_v8 = vshrl.u32 %v106_v6, 16  ;;  %v122_v17 = vshrl.u32 %v121_v10, 16  ;;  %v47_v24 = vstv %s256_s22  ;;  %s276_s2 = sld [smem:[#allocation3 + $0x9]] }
  0x1a   :  { %v57_v27 = vstv %s258_s23  ;;  %v41_v33 = vmul.f32 %v40_v21, %v28_v12  ;;  %v48_v35 = vmul.f32 %v47_v24, %v28_v12  ;;  %s279_s29 = sld [smem:[#allocation3 + $0xa]]  ;;  %v53_v42 = vrot.slane %v51_v25, 1 }
  0x1b   :  { %v93_v9 = vmul.u32 2146121005, %v92_v7  ;;  %v108_v11 = vxor.u32 %v107_v8, %v106_v6  ;;  %v123_v23 = vxor.u32 %v122_v17, %v121_v10  ;;  %v67_v28 = vstv %s260_s24  ;;  %s283_s4 = sld [smem:[#allocation3 + $0xc]] }
  0x1c   :  { %v58_v38 = vmul.f32 %v57_v27, %v28_v12  ;;  %v64_v39 = vstv %s265_s26  ;;  %v68_v40 = vmul.f32 %v67_v28, %v28_v12  ;;  %v38_v46 = vadd.f32 %v36_v32, %v31_v31  ;;  %s285_s5 = sld [smem:[#allocation3 + $0xf]] }
  0x1d   :  { %v94_v14 = vshrl.u32 %v93_v9, 15  ;;  %v109_v15 = vmul.u32 2146121005, %v108_v11  ;;  %v124_v30 = vmul.u32 2146121005, %v123_v23  ;;  %v74_v43 = vstv %s267_s27  ;;  %s287_s6 = sld [smem:[#allocation3 + $0xd]] }
  0x1e   :  { %s81_s30 = smul.f32 2.0, %s269_s28  ;;  %v43_v47 = vrot.slane %v41_v33, 2  ;;  %v65_v49 = vmul.f32 %v64_v39, %v28_v12  ;;  %v60_v52 = vrot.slane %v58_v38, 2  ;;  %v70_v53 = vrot.slane %v68_v40, 1  ;;  %s289_s7 = sld [smem:[#allocation3 + $0x10]] }
  0x1f   :  { %v95_v19 = vxor.u32 %v94_v14, %v93_v9  ;;  %v110_v22 = vshrl.u32 %v109_v15, 15  ;;  %v125_v37 = vshrl.u32 %v124_v30, 15  ;;  %v75_v54 = vmul.f32 %v74_v43, %v28_v12  ;;  %s291_s8 = sld [smem:[#allocation3 + $0xb]] }
  0x20   :  { %v55_v56 = vadd.f32 %v53_v42, %v48_v35  ;;  %v103_v57 = vstv %s81_s30  ;;  %v45_v60 = vadd.f32 %v43_v47, %v38_v46  ;;  %s293_s9 = sld [smem:[#allocation3 + $0xe]]  ;;  %v72_v0 = vadd.f32 %v70_v53, %v65_v49 }
  0x21   :  { %v96_v26 = vmul.u32 2221713035, %v95_v19  ;;  %v111_v29 = vxor.u32 %v110_v22, %v109_v15  ;;  %v126_v45 = vxor.u32 %v125_v37, %v124_v30  ;;  %v77_v1 = vrot.slane %v75_v54, 2  ;;  %s295_s10 = sld [smem:[#allocation3 + $0x11]] }
  0x22   :  { %v62_v3 = vadd.f32 %v60_v52, %v55_v56  ;;  %v137_v6 = vstv %s276_s2  ;;  %s298_s11 = sld [smem:[#allocation3 + $0x12]]  ;;  %v151_v8 = vstv %s283_s4  ;;  %v165_v9 = vstv %s285_s5 }
  0x23   :  { %v97_v34 = vshrl.u32 %v96_v26, 16  ;;  %v112_v36 = vmul.u32 2221713035, %v111_v29  ;;  %v127_v51 = vmul.u32 2221713035, %v126_v45  ;;  %v140_v12 = vstv %s279_s29  ;;  %s303_s12 = sld [smem:[#allocation3 + $0x13]] }
  0x24   :  { %v79_v13 = vadd.f32 %v77_v1, %v72_v0  ;;  %v154_v15 = vstv %s287_s6  ;;  %v168_v16 = vstv %s289_s7  ;;  %s209_s13 = sld [smem:[#allocation3 + $0x14]] }
  0x25   :  { %v98_v41 = vxor.u32 %v97_v34, %v96_v26  ;;  %v113_v44 = vshrl.u32 %v112_v36, 16  ;;  %v128_v59 = vshrl.u32 %v127_v51, 16  ;;  %v144_v25 = vstv %s291_s8 }
  0x26   :  { %v158_v26 = vstv %s293_s9 }
  0x27   :  { %v99_v48 = vshrl.u32 %v98_v41, 9  ;;  %v114_v50 = vxor.u32 %v113_v44, %v112_v36  ;;  %v129_v63 = vxor.u32 %v128_v59, %v127_v51  ;;  %v172_v27 = vstv %s295_s10 }
  0x28   :  { %v148_v35 = vstv %s298_s11 }
  0x29   :  { %v100_v55 = vor.u32 1065353216, %v99_v48  ;;  %v115_v58 = vshrl.u32 %v114_v50, 9  ;;  %v130_v5 = vshrl.u32 %v129_v63, 9  ;;  %v162_v36 = vstv %s303_s12 }
  0x2a   :  { %v176_v37 = vstv %s209_s13 }
  0x2b   :  { %v195_v61 = vadd.f32 -1.5, %v100_v55  ;;  %v116_v62 = vor.u32 1065353216, %v115_v58  ;;  %v131_v11 = vor.u32 1065353216, %v130_v5 }
  0x2d   :  { %v104_v2 = vmul.f32 %v195_v61, %v103_v57  ;;  %v196_v4 = vadd.f32 -1.5, %v116_v62  ;;  %v197_v18 = vadd.f32 -1.5, %v131_v11 }
  0x2f   :  { %v105_v7 = vadd.f32 %v104_v2, %v45_v60  ;;  %v119_v10 = vmul.f32 %v196_v4, %v103_v57  ;;  %v134_v21 = vmul.f32 %v197_v18, %v103_v57 }
  0x31   :  { %v138_v14 = vmul.f32 %v137_v6, %v105_v7  ;;  %v120_v17 = vadd.f32 %v119_v10, %v62_v3  ;;  %v152_v19 = vmul.f32 %v151_v8, %v105_v7  ;;  %v166_v20 = vmul.f32 %v165_v9, %v105_v7 }
  0x32   :  { %v135_v28 = vadd.f32 %v134_v21, %v79_v13 }
  0x33   :  { %v141_v22 = vmul.f32 %v140_v12, %v120_v17  ;;  %v155_v23 = vmul.f32 %v154_v15, %v120_v17  ;;  %v169_v24 = vmul.f32 %v168_v16, %v120_v17 }
  0x34   :  { %v145_v32 = vmul.f32 %v144_v25, %v135_v28  ;;  %v159_v33 = vmul.f32 %v158_v26, %v135_v28  ;;  %v173_v34 = vmul.f32 %v172_v27, %v135_v28 }
  0x35   :  { %v142_v29 = vadd.f32 %v141_v22, %v138_v14  ;;  %v156_v30 = vadd.f32 %v155_v23, %v152_v19  ;;  %v170_v31 = vadd.f32 %v169_v24, %v166_v20 }
  0x37   :  { %v146_v38 = vadd.f32 %v145_v32, %v142_v29  ;;  %v160_v39 = vadd.f32 %v159_v33, %v156_v30  ;;  %v174_v40 = vadd.f32 %v173_v34, %v170_v31 }
  0x39   :  { %v149_v41 = vadd.f32 %v148_v35, %v146_v38  ;;  %v163_v42 = vadd.f32 %v162_v36, %v160_v39  ;;  %v177_v43 = vadd.f32 %v176_v37, %v174_v40 }
  0x3b   :  { %178 = vst [vmem:[%s324_s3] sm:$0x1] %v149_v41  ;;  %179 = vst [vmem:[%s324_s3 + $0x1] sm:$0x1] %v163_v42 }
  0x3c   :  { %180 = vst [vmem:[%s324_s3 + $0x2] sm:$0x1] %v177_v43 }
  0x3d   :  { %185 = vsyncpa [#allocation4], 1 }

</bundles_post_ra>
